<compile_context>
chip_gen: v7x
topology: tpu7x:2x2x1
jax: 0.10.0
libtpu: 0.0.40
codegen_flags: <defaults>
</compile_context>

<pallas_src>
import math
import numpy as np
import jax
import jax.numpy as jnp
from jax.experimental import pallas as pl
from jax.experimental.pallas import tpu as pltpu


# ----------------------------- static plan -----------------------------------

def make_plan(latent_dim, spatial, channels):
    """Static per-layer geometry (square spatial dims, as in the module config)."""
    num_up = int(np.log2(spatial / latent_dim))
    plan = []
    in_ch, H = 2, latent_dim
    for i in range(num_up):
        out_ch = channels[i] if i < len(channels) else channels[-1]
        K, s, p, op = 5, 2, 2, 1
        Ho = (H - 1) * s - 2 * p + K + op
        plan.append(dict(kind="convT", K=K, stride=s, lo=K - 1 - p, hi=K - 1 - p + op,
                         Hin=H, Ho=Ho, Cin=in_ch, Cout=out_ch, act="leaky"))
        in_ch, H = out_ch, Ho
    plan.append(dict(kind="conv", K=3, stride=1, lo=1, hi=1, Hin=H, Ho=H,
                     Cin=in_ch, Cout=2, act="tanh"))
    return plan


def _ceil_to(x, m):
    return ((x + m - 1) // m) * m


def channel_pads(plan):
    """Per-layer channel pad for the lane-dense (B*H, W*cpad) layout.

    pads[i] pads layer i's input channels, pads[i+1] its output channels.  Output pads
    are chosen so Ho*pad is a multiple of 128: every in-kernel lane slice and every store
    is then full-lane-tile aligned (final output ends up exactly (B*Ho, 128*k))."""
    pads = [_ceil_to(plan[0]["Cin"], 8)]
    for L in plan:
        q = 128 // math.gcd(L["Ho"], 128)
        q = q * 8 // math.gcd(q, 8)          # lcm(q, 8)
        pads.append(_ceil_to(L["Cout"], q))
    return pads


# ------------------- one-time parameter preparation (hoisted) -----------------

def prepare_params(params, plan, B, pads, eps=1e-5):
    """Build, once, per layer:
         B_all : (W_src*pi, K*Wo*po)  column-tap weights (conv/convT as forward conv,
                 column dilation+padding and BN scale folded in), ky blocks concatenated
                 along lanes,
         A_stk : (K, B*Ho, B*H_src)   0/1 row-tap selection (row dilation+padding),
                 block-diagonal over the batch,
         shift : (1, Wo*po)           (bias - mean)*scale + beta, tiled over columns."""
    prepared = []
    raw = params["upsample"] + [params["final"]]
    for li, ((w, b, bn), L) in enumerate(zip(raw, plan)):
        gamma, beta, mean, var = bn
        scale = gamma / jnp.sqrt(var + eps)
        shift = (b - mean) * scale + beta
        K, st, lo = L["K"], L["stride"], L["lo"]
        Hs = Ws = L["Hin"]
        Ho = Wo = L["Ho"]
        Cin, Cout = L["Cin"], L["Cout"]
        pi, po = pads[li], pads[li + 1]

        if L["kind"] == "convT":
            # torch ConvTranspose2d weight (Cin, Cout, K, K) -> forward-conv (K, K, Cin, Cout)
            wc = jnp.flip(w, axis=(2, 3)).transpose(2, 3, 0, 1)
        else:
            # torch Conv2d weight (Cout, Cin, K, K) -> (K, K, Cin, Cout)
            wc = jnp.transpose(w, (2, 3, 1, 0))
        wc = wc * scale[None, None, None, :]                         # fold BN scale
        wc = jnp.pad(wc, ((0, 0), (0, 0), (0, pi - Cin), (0, po - Cout)))  # (K,K,pi,po)

        # Column-tap matrices: B_ky[xs*pi+ci, xo*po+co] = wc[ky, lo+st*xs-xo, ci, co]
        xs = np.arange(Ws)
        xo = np.arange(Wo)
        kx = lo + st * xs[:, None] - xo[None, :]                     # (Ws, Wo)
        valid = ((kx >= 0) & (kx < K)).astype(np.float32)
        kx_c = np.clip(kx, 0, K - 1)
        blocks = []
        for ky in range(K):
            Bk = wc[ky][kx_c] * valid[:, :, None, None]              # (Ws, Wo, pi, po)
            blocks.append(jnp.transpose(Bk, (0, 2, 1, 3)).reshape(Ws * pi, Wo * po))
        B_all = jnp.concatenate(blocks, axis=1).astype(jnp.float32)  # (Ws*pi, K*Wo*po)

        # Row-tap matrices: A_ky[yo, ys] = [lo + st*ys == yo + ky], block-diag over batch.
        ys = np.arange(Hs)
        yo = np.arange(Ho)
        A_list = []
        for ky in range(K):
            Ak = (lo + st * ys[None, :] == yo[:, None] + ky).astype(np.float32)
            A_list.append(np.kron(np.eye(B, dtype=np.float32), Ak))  # (B*Ho, B*Hs)
        A_stk = jnp.asarray(np.stack(A_list, axis=0))                # (K, B*Ho, B*Hs)

        sh = jnp.tile(jnp.pad(shift, (0, po - Cout)), Wo).reshape(1, Wo * po)
        prepared.append((B_all, A_stk, sh.astype(jnp.float32)))
    return prepared


# ----------------------------- fused Pallas kernel ----------------------------

def _build_kernel(plan, B, pads):
    n = len(plan)

    def kernel(*args):
        # args: x_ref, then (B_all, A_stk, shift) per layer, then out_ref.
        out_ref = args[1 + 3 * n]
        src = args[0][...]                                   # (B*H0, W0*pads[0])

        for li, L in enumerate(plan):
            b_ref = args[1 + 3 * li]                         # (Ws*pi, K*Wo*po)
            a_ref = args[2 + 3 * li]                         # (K, B*Ho, B*Hs)
            s_ref = args[3 + 3 * li]                         # (1, Wo*po)
            K, Ho = L["K"], L["Ho"]
            woc = Ho * pads[li + 1]                          # multiple of 128
            rows = B * Ho

            # One wide matmul: all K column-tap blocks at once (lane-aligned output).
            u = jnp.dot(src, b_ref[...], preferred_element_type=jnp.float32)

            # Accumulator starts at the broadcast (bias + BN) shift.
            z = jnp.broadcast_to(s_ref[...], (rows, woc))
            for ky in range(K):                              # K row-tap matmuls
                z = z + jnp.dot(a_ref[ky], u[:, ky * woc:(ky + 1) * woc],
                                preferred_element_type=jnp.float32)

            src = jnp.where(z >= 0, z, 0.2 * z) if L["act"] == "leaky" else jnp.tanh(z)

        out_ref[...] = src                                   # (B*Ho, Ho*pads[-1]) dense store

    return kernel


def make_decoder_forward(plan, B, latent_dim, spatial, pads):
    n = len(plan)
    last = plan[-1]
    out_rows = B * last["Ho"]
    out_cols = last["Ho"] * pads[-1]                         # e.g. (32, 128)
    kernel = _build_kernel(plan, B, pads)

    vmem = pl.BlockSpec(memory_space=pltpu.MemorySpace.VMEM)
    call = pl.pallas_call(
        kernel,
        out_shape=jax.ShapeDtypeStruct((out_rows, out_cols), jnp.float32),
        in_specs=[vmem] * (1 + 3 * n),
        out_specs=vmem,
    )

    @jax.jit
    def forward(x, prepared):
        # NCHW -> lane-dense (B*H, W*cpad) rows, channel-padded (tiny one-time glue).
        cin = x.shape[1]
        xf = jnp.transpose(x, (0, 2, 3, 1))
        xf = jnp.pad(xf, ((0, 0), (0, 0), (0, 0), (0, pads[0] - cin)))
        xf = xf.reshape(B * latent_dim, latent_dim * pads[0]).astype(jnp.float32)

        flat = [xf]
        for t in prepared:
            flat.extend(t)
        slab = call(*flat)                                   # (B*Ho, Ho*pad)

        Ho = last["Ho"]
        y = slab.reshape(B, Ho, Ho, pads[-1])[:, :spatial, :spatial, :last["Cout"]]
        return jnp.transpose(y, (0, 3, 1, 2))                # single NCHW conversion + crop

    return forward


# ------------------------- params init / XLA reference ------------------------

def init_decoder_params(key, channels, latent_dim, spatial):
    num_up = int(np.log2(spatial / latent_dim))
    params = {"upsample": [], "final": None}
    in_ch = 2
    for i in range(num_up):
        out_ch = channels[i] if i < len(channels) else channels[-1]
        key, kw, kb, kg, kbe, km, kv = jax.random.split(key, 7)
        w = jax.random.normal(kw, (in_ch, out_ch, 5, 5), jnp.float32) * 0.1
        b = jax.random.normal(kb, (out_ch,), jnp.float32) * 0.05
        bn = (1.0 + 0.1 * jax.random.normal(kg, (out_ch,), jnp.float32),
              0.05 * jax.random.normal(kbe, (out_ch,), jnp.float32),
              0.05 * jax.random.normal(km, (out_ch,), jnp.float32),
              1.0 + 0.1 * jnp.abs(jax.random.normal(kv, (out_ch,), jnp.float32)))
        params["upsample"].append((w, b, bn))
        in_ch = out_ch
    key, kw, kb, kg, kbe, km, kv = jax.random.split(key, 7)
    w = jax.random.normal(kw, (2, in_ch, 3, 3), jnp.float32) * 0.1
    b = jax.random.normal(kb, (2,), jnp.float32) * 0.05
    bn = (1.0 + 0.1 * jax.random.normal(kg, (2,), jnp.float32),
          0.05 * jax.random.normal(kbe, (2,), jnp.float32),
          0.05 * jax.random.normal(km, (2,), jnp.float32),
          1.0 + 0.1 * jnp.abs(jax.random.normal(kv, (2,), jnp.float32)))
    params["final"] = (w, b, bn)
    return params


def reference_forward(params, x, plan, spatial, eps=1e-5):
    """Pure-XLA eval-mode reference of the same decoder (numerical ground truth)."""
    h = x
    raw = params["upsample"] + [params["final"]]
    for (w, b, bn), L in zip(raw, plan):
        gamma, beta, mean, var = bn
        lo, hi = L["lo"], L["hi"]
        if L["kind"] == "convT":
            wc = jnp.flip(w, axis=(2, 3)).transpose(1, 0, 2, 3)   # (Cout,Cin,K,K)
            dil = (L["stride"], L["stride"])
        else:
            wc = w
            dil = (1, 1)
        y = jax.lax.conv_general_dilated(
            h, wc, window_strides=(1, 1), padding=[(lo, hi), (lo, hi)],
            lhs_dilation=dil, dimension_numbers=("NCHW", "OIHW", "NCHW"),
            precision=jax.lax.Precision.HIGHEST)
        y = y + b[None, :, None, None]
        y = (y - mean[None, :, None, None]) / jnp.sqrt(var[None, :, None, None] + eps)
        y = y * gamma[None, :, None, None] + beta[None, :, None, None]
        h = jnp.where(y >= 0, y, 0.2 * y) if L["act"] == "leaky" else jnp.tanh(y)
    if h.shape[-1] != spatial or h.shape[-2] != spatial:
        h = h[:, :, :spatial, :spatial]
    return h


# --------------------------------- main ---------------------------------------

if __name__ == "__main__":
    # conf: method='conv', latent_dim=4, spatial=16 ; channels=[8, 4] ; batch=2
    latent_dim, spatial, channels, B = 4, 16, [8, 4], 2
    key = jax.random.PRNGKey(0)
    key, kx = jax.random.split(key)
    x = jax.random.normal(kx, (B, 2, latent_dim, latent_dim), jnp.float32)

    plan = make_plan(latent_dim, spatial, channels)
    pads = channel_pads(plan)
    params = init_decoder_params(key, channels, latent_dim, spatial)
    prepared = prepare_params(params, plan, B, pads)            # one-time weight prep
    forward = make_decoder_forward(plan, B, latent_dim, spatial, pads)

    y = forward(x, prepared)
    jax.block_until_ready(y)

    assert y.shape == (B, 2, spatial, spatial), y.shape
    assert bool(jnp.all(jnp.isfinite(y)))

    # Numerical check vs the HIGHEST-precision XLA eval-mode reference
    # (tightened 10x from the previous 5e-2; typically ~1e-5 with f32 MXU passes).
    y_ref = reference_forward(params, x, plan, spatial)
    err = float(jnp.max(jnp.abs(y - y_ref)))
    assert err < 5e-3, err

    print("KERNEL_OK")
</pallas_src>

<mosaic_0001>
module attributes {stable_mosaic.version = 11 : i64} {
  func.func @kernel(%arg0: memref<8x32xf32, #tpu.memory_space<vmem>>, %arg1: memref<32x640xf32, #tpu.memory_space<vmem>>, %arg2: memref<5x16x8xf32, #tpu.memory_space<vmem>>, %arg3: memref<1x128xf32, #tpu.memory_space<vmem>>, %arg4: memref<128x640xf32, #tpu.memory_space<vmem>>, %arg5: memref<5x32x16xf32, #tpu.memory_space<vmem>>, %arg6: memref<1x128xf32, #tpu.memory_space<vmem>>, %arg7: memref<128x384xf32, #tpu.memory_space<vmem>>, %arg8: memref<3x32x32xf32, #tpu.memory_space<vmem>>, %arg9: memref<1x128xf32, #tpu.memory_space<vmem>>, %arg10: memref<32x128xf32, #tpu.memory_space<vmem>>) attributes {dimension_semantics = [], scalar_prefetch = 0 : i64, scratch_operands = 0 : i64, tpu.core_type = #tpu.core_type<tc>} {
    %c0 = arith.constant 0 : index
    %c0_0 = arith.constant 0 : index
    %0 = vector.load %arg0[%c0, %c0_0] : memref<8x32xf32, #tpu.memory_space<vmem>>, vector<8x32xf32>
    %c0_1 = arith.constant 0 : index
    %c0_2 = arith.constant 0 : index
    %1 = vector.load %arg1[%c0_1, %c0_2] : memref<32x640xf32, #tpu.memory_space<vmem>>, vector<32x640xf32>
    %cst = arith.constant dense<0.000000e+00> : vector<8x640xf32>
    %2 = tpu.matmul %0, %1, %cst {dimension_numbers = #tpu.dot_dimension_numbers<[1], [0], [0], [1], [0, 0, 1, 1], [], []>} : vector<8x32xf32>, vector<32x640xf32>, vector<8x640xf32> -> vector<8x640xf32>
    %c0_3 = arith.constant 0 : index
    %c0_4 = arith.constant 0 : index
    %3 = vector.load %arg3[%c0_3, %c0_4] : memref<1x128xf32, #tpu.memory_space<vmem>>, vector<1x128xf32>
    %4 = vector.shape_cast %3 : vector<1x128xf32> to vector<1x128xf32>
    %5 = vector.broadcast %4 : vector<1x128xf32> to vector<16x128xf32>
    %c0_5 = arith.constant 0 : index
    %c0_6 = arith.constant 0 : index
    %c0_7 = arith.constant 0 : index
    %6 = vector.load %arg2[%c0_5, %c0_6, %c0_7] : memref<5x16x8xf32, #tpu.memory_space<vmem>>, vector<1x16x8xf32>
    %7 = vector.shape_cast %6 : vector<1x16x8xf32> to vector<16x8xf32>
    %8 = vector.extract_strided_slice %2 {offsets = [0, 0], sizes = [8, 128], strides = [1, 1]} : vector<8x640xf32> to vector<8x128xf32>
    %cst_8 = arith.constant dense<0.000000e+00> : vector<16x128xf32>
    %9 = tpu.matmul %7, %8, %cst_8 {dimension_numbers = #tpu.dot_dimension_numbers<[1], [0], [0], [1], [0, 0, 1, 1], [], []>} : vector<16x8xf32>, vector<8x128xf32>, vector<16x128xf32> -> vector<16x128xf32>
    %10 = arith.addf %5, %9 : vector<16x128xf32>
    %c1 = arith.constant 1 : index
    %c0_9 = arith.constant 0 : index
    %c0_10 = arith.constant 0 : index
    %11 = vector.load %arg2[%c1, %c0_9, %c0_10] : memref<5x16x8xf32, #tpu.memory_space<vmem>>, vector<1x16x8xf32>
    %12 = vector.shape_cast %11 : vector<1x16x8xf32> to vector<16x8xf32>
    %13 = vector.extract_strided_slice %2 {offsets = [0, 128], sizes = [8, 128], strides = [1, 1]} : vector<8x640xf32> to vector<8x128xf32>
    %cst_11 = arith.constant dense<0.000000e+00> : vector<16x128xf32>
    %14 = tpu.matmul %12, %13, %cst_11 {dimension_numbers = #tpu.dot_dimension_numbers<[1], [0], [0], [1], [0, 0, 1, 1], [], []>} : vector<16x8xf32>, vector<8x128xf32>, vector<16x128xf32> -> vector<16x128xf32>
    %15 = arith.addf %10, %14 : vector<16x128xf32>
    %c2 = arith.constant 2 : index
    %c0_12 = arith.constant 0 : index
    %c0_13 = arith.constant 0 : index
    %16 = vector.load %arg2[%c2, %c0_12, %c0_13] : memref<5x16x8xf32, #tpu.memory_space<vmem>>, vector<1x16x8xf32>
    %17 = vector.shape_cast %16 : vector<1x16x8xf32> to vector<16x8xf32>
    %18 = vector.extract_strided_slice %2 {offsets = [0, 256], sizes = [8, 128], strides = [1, 1]} : vector<8x640xf32> to vector<8x128xf32>
    %cst_14 = arith.constant dense<0.000000e+00> : vector<16x128xf32>
    %19 = tpu.matmul %17, %18, %cst_14 {dimension_numbers = #tpu.dot_dimension_numbers<[1], [0], [0], [1], [0, 0, 1, 1], [], []>} : vector<16x8xf32>, vector<8x128xf32>, vector<16x128xf32> -> vector<16x128xf32>
    %20 = arith.addf %15, %19 : vector<16x128xf32>
    %c3 = arith.constant 3 : index
    %c0_15 = arith.constant 0 : index
    %c0_16 = arith.constant 0 : index
    %21 = vector.load %arg2[%c3, %c0_15, %c0_16] : memref<5x16x8xf32, #tpu.memory_space<vmem>>, vector<1x16x8xf32>
    %22 = vector.shape_cast %21 : vector<1x16x8xf32> to vector<16x8xf32>
    %23 = vector.extract_strided_slice %2 {offsets = [0, 384], sizes = [8, 128], strides = [1, 1]} : vector<8x640xf32> to vector<8x128xf32>
    %cst_17 = arith.constant dense<0.000000e+00> : vector<16x128xf32>
    %24 = tpu.matmul %22, %23, %cst_17 {dimension_numbers = #tpu.dot_dimension_numbers<[1], [0], [0], [1], [0, 0, 1, 1], [], []>} : vector<16x8xf32>, vector<8x128xf32>, vector<16x128xf32> -> vector<16x128xf32>
    %25 = arith.addf %20, %24 : vector<16x128xf32>
    %c4 = arith.constant 4 : index
    %c0_18 = arith.constant 0 : index
    %c0_19 = arith.constant 0 : index
    %26 = vector.load %arg2[%c4, %c0_18, %c0_19] : memref<5x16x8xf32, #tpu.memory_space<vmem>>, vector<1x16x8xf32>
    %27 = vector.shape_cast %26 : vector<1x16x8xf32> to vector<16x8xf32>
    %28 = vector.extract_strided_slice %2 {offsets = [0, 512], sizes = [8, 128], strides = [1, 1]} : vector<8x640xf32> to vector<8x128xf32>
    %cst_20 = arith.constant dense<0.000000e+00> : vector<16x128xf32>
    %29 = tpu.matmul %27, %28, %cst_20 {dimension_numbers = #tpu.dot_dimension_numbers<[1], [0], [0], [1], [0, 0, 1, 1], [], []>} : vector<16x8xf32>, vector<8x128xf32>, vector<16x128xf32> -> vector<16x128xf32>
    %30 = arith.addf %25, %29 : vector<16x128xf32>
    %cst_21 = arith.constant 0.000000e+00 : f32
    %31 = vector.broadcast %cst_21 : f32 to vector<16x128xf32>
    %32 = arith.cmpf oge, %30, %31 : vector<16x128xf32>
    %cst_22 = arith.constant 2.000000e-01 : f32
    %33 = vector.broadcast %cst_22 : f32 to vector<16x128xf32>
    %34 = arith.mulf %33, %30 : vector<16x128xf32>
    %35 = arith.select %32, %30, %34 : vector<16x128xi1>, vector<16x128xf32>
    %c0_23 = arith.constant 0 : index
    %c0_24 = arith.constant 0 : index
    %36 = vector.load %arg4[%c0_23, %c0_24] : memref<128x640xf32, #tpu.memory_space<vmem>>, vector<128x640xf32>
    %cst_25 = arith.constant dense<0.000000e+00> : vector<16x640xf32>
    %37 = tpu.matmul %35, %36, %cst_25 {dimension_numbers = #tpu.dot_dimension_numbers<[1], [0], [0], [1], [0, 0, 1, 1], [], []>} : vector<16x128xf32>, vector<128x640xf32>, vector<16x640xf32> -> vector<16x640xf32>
    %c0_26 = arith.constant 0 : index
    %c0_27 = arith.constant 0 : index
    %38 = vector.load %arg6[%c0_26, %c0_27] : memref<1x128xf32, #tpu.memory_space<vmem>>, vector<1x128xf32>
    %39 = vector.shape_cast %38 : vector<1x128xf32> to vector<1x128xf32>
    %40 = vector.broadcast %39 : vector<1x128xf32> to vector<32x128xf32>
    %c0_28 = arith.constant 0 : index
    %c0_29 = arith.constant 0 : index
    %c0_30 = arith.constant 0 : index
    %41 = vector.load %arg5[%c0_28, %c0_29, %c0_30] : memref<5x32x16xf32, #tpu.memory_space<vmem>>, vector<1x32x16xf32>
    %42 = vector.shape_cast %41 : vector<1x32x16xf32> to vector<32x16xf32>
    %43 = vector.extract_strided_slice %37 {offsets = [0, 0], sizes = [16, 128], strides = [1, 1]} : vector<16x640xf32> to vector<16x128xf32>
    %cst_31 = arith.constant dense<0.000000e+00> : vector<32x128xf32>
    %44 = tpu.matmul %42, %43, %cst_31 {dimension_numbers = #tpu.dot_dimension_numbers<[1], [0], [0], [1], [0, 0, 1, 1], [], []>} : vector<32x16xf32>, vector<16x128xf32>, vector<32x128xf32> -> vector<32x128xf32>
    %45 = arith.addf %40, %44 : vector<32x128xf32>
    %c1_32 = arith.constant 1 : index
    %c0_33 = arith.constant 0 : index
    %c0_34 = arith.constant 0 : index
    %46 = vector.load %arg5[%c1_32, %c0_33, %c0_34] : memref<5x32x16xf32, #tpu.memory_space<vmem>>, vector<1x32x16xf32>
    %47 = vector.shape_cast %46 : vector<1x32x16xf32> to vector<32x16xf32>
    %48 = vector.extract_strided_slice %37 {offsets = [0, 128], sizes = [16, 128], strides = [1, 1]} : vector<16x640xf32> to vector<16x128xf32>
    %cst_35 = arith.constant dense<0.000000e+00> : vector<32x128xf32>
    %49 = tpu.matmul %47, %48, %cst_35 {dimension_numbers = #tpu.dot_dimension_numbers<[1], [0], [0], [1], [0, 0, 1, 1], [], []>} : vector<32x16xf32>, vector<16x128xf32>, vector<32x128xf32> -> vector<32x128xf32>
    %50 = arith.addf %45, %49 : vector<32x128xf32>
    %c2_36 = arith.constant 2 : index
    %c0_37 = arith.constant 0 : index
    %c0_38 = arith.constant 0 : index
    %51 = vector.load %arg5[%c2_36, %c0_37, %c0_38] : memref<5x32x16xf32, #tpu.memory_space<vmem>>, vector<1x32x16xf32>
    %52 = vector.shape_cast %51 : vector<1x32x16xf32> to vector<32x16xf32>
    %53 = vector.extract_strided_slice %37 {offsets = [0, 256], sizes = [16, 128], strides = [1, 1]} : vector<16x640xf32> to vector<16x128xf32>
    %cst_39 = arith.constant dense<0.000000e+00> : vector<32x128xf32>
    %54 = tpu.matmul %52, %53, %cst_39 {dimension_numbers = #tpu.dot_dimension_numbers<[1], [0], [0], [1], [0, 0, 1, 1], [], []>} : vector<32x16xf32>, vector<16x128xf32>, vector<32x128xf32> -> vector<32x128xf32>
    %55 = arith.addf %50, %54 : vector<32x128xf32>
    %c3_40 = arith.constant 3 : index
    %c0_41 = arith.constant 0 : index
    %c0_42 = arith.constant 0 : index
    %56 = vector.load %arg5[%c3_40, %c0_41, %c0_42] : memref<5x32x16xf32, #tpu.memory_space<vmem>>, vector<1x32x16xf32>
    %57 = vector.shape_cast %56 : vector<1x32x16xf32> to vector<32x16xf32>
    %58 = vector.extract_strided_slice %37 {offsets = [0, 384], sizes = [16, 128], strides = [1, 1]} : vector<16x640xf32> to vector<16x128xf32>
    %cst_43 = arith.constant dense<0.000000e+00> : vector<32x128xf32>
    %59 = tpu.matmul %57, %58, %cst_43 {dimension_numbers = #tpu.dot_dimension_numbers<[1], [0], [0], [1], [0, 0, 1, 1], [], []>} : vector<32x16xf32>, vector<16x128xf32>, vector<32x128xf32> -> vector<32x128xf32>
    %60 = arith.addf %55, %59 : vector<32x128xf32>
    %c4_44 = arith.constant 4 : index
    %c0_45 = arith.constant 0 : index
    %c0_46 = arith.constant 0 : index
    %61 = vector.load %arg5[%c4_44, %c0_45, %c0_46] : memref<5x32x16xf32, #tpu.memory_space<vmem>>, vector<1x32x16xf32>
    %62 = vector.shape_cast %61 : vector<1x32x16xf32> to vector<32x16xf32>
    %63 = vector.extract_strided_slice %37 {offsets = [0, 512], sizes = [16, 128], strides = [1, 1]} : vector<16x640xf32> to vector<16x128xf32>
    %cst_47 = arith.constant dense<0.000000e+00> : vector<32x128xf32>
    %64 = tpu.matmul %62, %63, %cst_47 {dimension_numbers = #tpu.dot_dimension_numbers<[1], [0], [0], [1], [0, 0, 1, 1], [], []>} : vector<32x16xf32>, vector<16x128xf32>, vector<32x128xf32> -> vector<32x128xf32>
    %65 = arith.addf %60, %64 : vector<32x128xf32>
    %cst_48 = arith.constant 0.000000e+00 : f32
    %66 = vector.broadcast %cst_48 : f32 to vector<32x128xf32>
    %67 = arith.cmpf oge, %65, %66 : vector<32x128xf32>
    %cst_49 = arith.constant 2.000000e-01 : f32
    %68 = vector.broadcast %cst_49 : f32 to vector<32x128xf32>
    %69 = arith.mulf %68, %65 : vector<32x128xf32>
    %70 = arith.select %67, %65, %69 : vector<32x128xi1>, vector<32x128xf32>
    %c0_50 = arith.constant 0 : index
    %c0_51 = arith.constant 0 : index
    %71 = vector.load %arg7[%c0_50, %c0_51] : memref<128x384xf32, #tpu.memory_space<vmem>>, vector<128x384xf32>
    %cst_52 = arith.constant dense<0.000000e+00> : vector<32x384xf32>
    %72 = tpu.matmul %70, %71, %cst_52 {dimension_numbers = #tpu.dot_dimension_numbers<[1], [0], [0], [1], [0, 0, 1, 1], [], []>} : vector<32x128xf32>, vector<128x384xf32>, vector<32x384xf32> -> vector<32x384xf32>
    %c0_53 = arith.constant 0 : index
    %c0_54 = arith.constant 0 : index
    %73 = vector.load %arg9[%c0_53, %c0_54] : memref<1x128xf32, #tpu.memory_space<vmem>>, vector<1x128xf32>
    %74 = vector.shape_cast %73 : vector<1x128xf32> to vector<1x128xf32>
    %75 = vector.broadcast %74 : vector<1x128xf32> to vector<32x128xf32>
    %c0_55 = arith.constant 0 : index
    %c0_56 = arith.constant 0 : index
    %c0_57 = arith.constant 0 : index
    %76 = vector.load %arg8[%c0_55, %c0_56, %c0_57] : memref<3x32x32xf32, #tpu.memory_space<vmem>>, vector<1x32x32xf32>
    %77 = vector.shape_cast %76 : vector<1x32x32xf32> to vector<32x32xf32>
    %78 = vector.extract_strided_slice %72 {offsets = [0, 0], sizes = [32, 128], strides = [1, 1]} : vector<32x384xf32> to vector<32x128xf32>
    %cst_58 = arith.constant dense<0.000000e+00> : vector<32x128xf32>
    %79 = tpu.matmul %77, %78, %cst_58 {dimension_numbers = #tpu.dot_dimension_numbers<[1], [0], [0], [1], [0, 0, 1, 1], [], []>} : vector<32x32xf32>, vector<32x128xf32>, vector<32x128xf32> -> vector<32x128xf32>
    %80 = arith.addf %75, %79 : vector<32x128xf32>
    %c1_59 = arith.constant 1 : index
    %c0_60 = arith.constant 0 : index
    %c0_61 = arith.constant 0 : index
    %81 = vector.load %arg8[%c1_59, %c0_60, %c0_61] : memref<3x32x32xf32, #tpu.memory_space<vmem>>, vector<1x32x32xf32>
    %82 = vector.shape_cast %81 : vector<1x32x32xf32> to vector<32x32xf32>
    %83 = vector.extract_strided_slice %72 {offsets = [0, 128], sizes = [32, 128], strides = [1, 1]} : vector<32x384xf32> to vector<32x128xf32>
    %cst_62 = arith.constant dense<0.000000e+00> : vector<32x128xf32>
    %84 = tpu.matmul %82, %83, %cst_62 {dimension_numbers = #tpu.dot_dimension_numbers<[1], [0], [0], [1], [0, 0, 1, 1], [], []>} : vector<32x32xf32>, vector<32x128xf32>, vector<32x128xf32> -> vector<32x128xf32>
    %85 = arith.addf %80, %84 : vector<32x128xf32>
    %c2_63 = arith.constant 2 : index
    %c0_64 = arith.constant 0 : index
    %c0_65 = arith.constant 0 : index
    %86 = vector.load %arg8[%c2_63, %c0_64, %c0_65] : memref<3x32x32xf32, #tpu.memory_space<vmem>>, vector<1x32x32xf32>
    %87 = vector.shape_cast %86 : vector<1x32x32xf32> to vector<32x32xf32>
    %88 = vector.extract_strided_slice %72 {offsets = [0, 256], sizes = [32, 128], strides = [1, 1]} : vector<32x384xf32> to vector<32x128xf32>
    %cst_66 = arith.constant dense<0.000000e+00> : vector<32x128xf32>
    %89 = tpu.matmul %87, %88, %cst_66 {dimension_numbers = #tpu.dot_dimension_numbers<[1], [0], [0], [1], [0, 0, 1, 1], [], []>} : vector<32x32xf32>, vector<32x128xf32>, vector<32x128xf32> -> vector<32x128xf32>
    %90 = arith.addf %85, %89 : vector<32x128xf32>
    %91 = math.tanh %90 : vector<32x128xf32>
    %c0_67 = arith.constant 0 : index
    %c0_68 = arith.constant 0 : index
    %92 = vector.load %arg10[%c0_67, %c0_68] : memref<32x128xf32, #tpu.memory_space<vmem>>, vector<32x128xf32>
    tpu.vector_store %arg10[%c0_67, %c0_68], %91 {strides = array<i32>} : memref<32x128xf32, #tpu.memory_space<vmem>>, vector<32x128xf32>,
    return
  }
}

</mosaic_0001>

<bundles_post_ra>
// kernel: forward.1
= control target key start
LH: loop header
LB: loop body
LE: loop exit
PB: predicated region body
PF: predicated region fallthrough
CT: control target
= control target key end

     0   :  { %15 = vsyncpa [#allocation3], 0  ;;  %s3321_s0 = inlined_call_operand.vmem [shape: f32[8,32], index: 0, kind: input, shape index: {}]   ;;  %s3322_s1 = inlined_call_operand.hbm [shape: f32[32,640], index: 1, kind: input, shape index: {}]   ;;  %s3323_s2 = inlined_call_operand.vmem [shape: f32[5,16,8], index: 2, kind: input, shape index: {}]   ;;  %s3324_s3 = inlined_call_operand.vmem [shape: f32[1,128], index: 3, kind: input, shape index: {}]   ;;  %s3325_s4 = inlined_call_operand.hbm [shape: f32[128,640], index: 4, kind: input, shape index: {}]   ;;  %s3326_s5 = inlined_call_operand.vmem [shape: f32[5,32,16], index: 5, kind: input, shape index: {}]   ;;  %s3327_s6 = inlined_call_operand.vmem [shape: f32[1,128], index: 6, kind: input, shape index: {}]   ;;  %s3328_s7 = inlined_call_operand.vmem [shape: f32[128,384], index: 7, kind: input, shape index: {}]   ;;  %s3329_s8 = inlined_call_operand.vmem [shape: f32[3,32,32], index: 8, kind: input, shape index: {}]   ;;  %s3330_s9 = inlined_call_operand.vmem [shape: f32[1,128], index: 9, kind: input, shape index: {}]   ;;  %s3331_s10 = inlined_call_operand.vmem [shape: f32[32,128], index: 10, kind: output, shape index: {}]  }
   0x1   :  { %16 = vsyncpa [#allocation5], 0  ;;  %s2885_s13 = smov [#allocation2]   ;;  %s2837_s17 = scalar_lea.hbm %s3322_s1, 2560 }
   0x2   :  { %s24_s14 = sshll.u32 %s2885_s13, 4  ;;  %p2838_p0 = scmp.ne.s32.totalorder %s3322_s1, %s2837_s17  ;;  %s25_s14 = int_to_ptr.vmem [resolvable:$true] %s24_s14 }
   0x3   :  { %p2841_p1 = scmp.lt.u32.totalorder %s2837_s17, %s3322_s1 }
   0x5   :  { %p2843_p2 = pnand %p2841_p1, %p2838_p0 }
   0x7   :  { %2846 = shalt.err (!%p2843_p2)
}
   0x8   :  { %s2847_s22 = scalar_lea.vmem %s25_s14, 2560  ;;  %p2852_p4 = scmp.lt.s32.totalorder %s25_s14, %s25_s14 }
   0x9   :  { %p2848_p3 = scmp.ne.s32.totalorder %s25_s14, %s2847_s22  ;;  %p2853_p5 = scmp.lt.s32.totalorder %s2847_s22, %s2847_s22 }
   0xb   :  { %p2854_p6 = por %p2853_p5, %p2852_p4 }
   0xd   :  { %p2855_p7 = pnand %p2854_p6, %p2848_p3 }
   0xf   :  { %2858 = shalt.err (!%p2855_p7)
}
  0x10   :  { %s2886_s23 = smov 640   ;;  %s2887_s24 = smov 40  }
  0x11   :  { %30 = dma.hbm_to_vmem [thread:$0]  %s3322_s1, 2560, %s25_s14, [#allocation3], %s2886_s23, %s2886_s23, %s2887_s24  }
  0x12   :  { %s2888_s27 = smov [#allocation4]   ;;  %s2859_s11 = scalar_lea.hbm %s3325_s4, 10240 }
  0x13   :  { %s40_s28 = sshll.u32 %s2888_s27, 4  ;;  %p2860_p8 = scmp.ne.s32.totalorder %s3325_s4, %s2859_s11  ;;  %s41_s28 = int_to_ptr.vmem [resolvable:$true] %s40_s28 }
  0x14   :  { %p2863_p9 = scmp.lt.u32.totalorder %s2859_s11, %s3325_s4 }
  0x16   :  { %p2865_p10 = pnand %p2863_p9, %p2860_p8 }
  0x18   :  { %2868 = shalt.err (!%p2865_p10)
}
  0x19   :  { %s2869_s17 = scalar_lea.vmem %s41_s28, 10240  ;;  %p2874_p12 = scmp.lt.s32.totalorder %s41_s28, %s41_s28 }
  0x1a   :  { %p2870_p11 = scmp.ne.s32.totalorder %s41_s28, %s2869_s17  ;;  %p2875_p13 = scmp.lt.s32.totalorder %s2869_s17, %s2869_s17 }
  0x1c   :  { %p2876_p0 = por %p2875_p13, %p2874_p12 }
  0x1e   :  { %p2877_p1 = pnand %p2876_p0, %p2870_p11 }
  0x20   :  { %2880 = shalt.err (!%p2877_p1)
}
  0x21   :  { %46 = dma.hbm_to_vmem [thread:$0]  %s3325_s4, 10240, %s41_s28, [#allocation5], %s2886_s23, %s2886_s23, %s2887_s24  }
  0x22   :  { %2881 = dma.done.wait [#allocation3], 2560  }
  0x23   :  { %2882 = vsyncadd [#allocation3], 4294964736 }
  0x24   :  { %2883 = dma.done.wait [#allocation5], 10240  }
  0x25   :  { %2884 = vsyncadd [#allocation5], 4294957056  ;;  %v2889_v0 = vmov 0.0   ;;  %v2890_v1 = vmov 0.0|0.0   ;;  %vm2891_vm0 = vmmov 0   ;;  %v65_v2 = vld [vmem:[#allocation2 + $0x8] sm:$0xff] }
  0x26   :  { %152 = vmatprep.mubr.f32.mxu1 %v2889_v0  ;;  %2570 = vmatprep.subr.bf16.mxu0 %v2890_v1  ;;  %v70_v3 = vld [vmem:[#allocation2 + $0x30] sm:$0xff]  ;;  %v64_v4 = vld [vmem:[#allocation2] sm:$0xff]  ;;  %v69_v6 = vld [vmem:[#allocation2 + $0x28] sm:$0xff]  ;;  %vm84_vm1 = vcmask 261120   ;;  %vm309_vm2 = vcmask 64512   ;;  %vm1063_vm5 = vcmask 130048  }
  0x27   :  { %2361 = vmatprep.mubr.msk.f32.mxu0 %vm2891_vm0, %v2889_v0  ;;  %v2554_v5 = vpack.c.bf16 %v70_v3, %v65_v2  ;;  %v75_v7 = vld [vmem:[#allocation2 + $0x58] sm:$0xff]  ;;  %v80_v8 = vld [vmem:[#allocation2 + $0x80] sm:$0xff]  ;;  %v2556_v9 = vpack.c.bf16 %v69_v6, %v64_v4  ;;  %v74_v11 = vld [vmem:[#allocation2 + $0x50] sm:$0xff] }
  0x28   :  { %v2558_v10 = vpack.c.bf16 %v80_v8, %v75_v7  ;;  %v79_v12 = vld [vmem:[#allocation2 + $0x78] sm:$0xff]  ;;  %v72_v14 = vld [vmem:[#allocation2 + $0x40] sm:$0xff]  ;;  %v66_v16 = vld [vmem:[#allocation2 + $0x10] sm:$0xff] }
  0x29   :  { %2555 = vmatprep.subr.bf16.mxu1 %v2554_v5  ;;  %v67_v13 = vld [vmem:[#allocation2 + $0x18] sm:$0xff]  ;;  %v2560_v15 = vpack.c.bf16 %v79_v12, %v74_v11  ;;  %v77_v19 = vld [vmem:[#allocation2 + $0x68] sm:$0xff]  ;;  %v82_v20 = vld [vmem:[#allocation2 + $0x90] sm:$0xff] }
  0x2a   :  { %2557 = vmatpush1.bf16.msra.mxu1 %v2556_v9  ;;  %v71_v17 = vld [vmem:[#allocation2 + $0x38] sm:$0xff]  ;;  %v2562_v18 = vpack.c.bf16 %v72_v14, %v67_v13  ;;  %v68_v21 = vld [vmem:[#allocation2 + $0x20] sm:$0xff]  ;;  %v73_v22 = vld [vmem:[#allocation2 + $0x48] sm:$0xff]  ;;  %v2566_v28 = vpack.c.bf16 %v82_v20, %v77_v19 }
  0x2b   :  { %2559 = vmatprep.subr.bf16.mxu1 %v2558_v10  ;;  %v78_v23 = vld [vmem:[#allocation2 + $0x70] sm:$0xff]  ;;  %v83_v24 = vld [vmem:[#allocation2 + $0x98] sm:$0xff]  ;;  %v2571_v25 = vpack.c.bf16 %v73_v22, %v68_v21  ;;  %v63_v26 = vld [vmem:[%s3321_s0] sm:$0xff]  ;;  %v2564_v27 = vpack.c.bf16 %v71_v17, %v66_v16 }
  0x2c   :  { %v76_v29 = vld [vmem:[#allocation2 + $0x60] sm:$0xff]  ;;  %v81_v30 = vld [vmem:[#allocation2 + $0x88] sm:$0xff]  ;;  %v2574_v31 = vpack.c.bf16 %v83_v24, %v78_v23  ;;  %v749_v35 = vld [vmem:[#allocation4 + $0x30] sm:$0xff] }
  0x2d   :  { %2572 = vmatpush3.bf16.msra.mxu0 %v2571_v25  ;;  %v2568_v32 = vpack.c.bf16 %v81_v30, %v76_v29  ;;  %v307_v33 = vld [vmem:[%s3323_s2] sm:$0xff]  ;;  %v744_v34 = vld [vmem:[#allocation4 + $0x8] sm:$0xff]  ;;  %v754_v40 = vld [vmem:[#allocation4 + $0x58] sm:$0xff] }
  0x2e   :  { %2561 = vmatpush1.bf16.msra.mxu1 %v2560_v15  ;;  %2573 = vmatprep.subr.bf16.mxu0 %v2890_v1  ;;  %v743_v36 = vld [vmem:[#allocation4] sm:$0xff]  ;;  %v2576_v37 = vpack.c.bf16 %v749_v35, %v744_v34  ;;  %v748_v38 = vld [vmem:[#allocation4 + $0x28] sm:$0xff]  ;;  %v753_v42 = vld [vmem:[#allocation4 + $0x50] sm:$0xff] }
  0x2f   :  { %2563 = vmatprep.subr.bf16.mxu1 %v2562_v18  ;;  %v2578_v39 = vpack.c.bf16 %v748_v38, %v743_v36  ;;  %v759_v41 = vld [vmem:[#allocation4 + $0x80] sm:$0xff]  ;;  %v758_v43 = vld [vmem:[#allocation4 + $0x78] sm:$0xff]  ;;  %v764_v46 = vld [vmem:[#allocation4 + $0xa8] sm:$0xff] }
  0x30   :  { %v2580_v44 = vpack.c.bf16 %v759_v41, %v754_v40  ;;  %v2582_v45 = vpack.c.bf16 %v758_v43, %v753_v42  ;;  %v769_v47 = vld [vmem:[#allocation4 + $0xd0] sm:$0xff]  ;;  %v763_v49 = vld [vmem:[#allocation4 + $0xa0] sm:$0xff]  ;;  %v768_v50 = vld [vmem:[#allocation4 + $0xc8] sm:$0xff] }
  0x31   :  { %2161 = vmatmul.mubr.msk.f32.vlgmr.msra.gmra.mrb[0].mxu1 %vm84_vm1, %v63_v26  ;;  %2575 = vmatpush3.bf16.msra.mxu0 %v2574_v31  ;;  %v2584_v48 = vpack.c.bf16 %v769_v47, %v764_v46  ;;  %v2586_v51 = vpack.c.bf16 %v768_v50, %v763_v49  ;;  %v774_v52 = vld [vmem:[#allocation4 + $0xf8] sm:$0xff]  ;;  %v779_v53 = vld [vmem:[#allocation4 + $0x120] sm:$0xff]  ;;  %v773_v54 = vld [vmem:[#allocation4 + $0xf0] sm:$0xff] }
  0x32   :  { %2565 = vmatpush1.bf16.msra.mxu1 %v2564_v27  ;;  %223 = vmatprep.mubr.f32.mxu1 %v2889_v0  ;;  %v2588_v55 = vpack.c.bf16 %v779_v53, %v774_v52  ;;  %v778_v56 = vld [vmem:[#allocation4 + $0x118] sm:$0xff]  ;;  %v784_v58 = vld [vmem:[#allocation4 + $0x148] sm:$0xff]  ;;  %v789_v59 = vld [vmem:[#allocation4 + $0x170] sm:$0xff] }
  0x33   :  { %2567 = vmatprep.subr.bf16.mxu1 %v2566_v28  ;;  %2577 = vmatprep.subr.bf16.mxu0 %v2576_v37  ;;  %v2590_v57 = vpack.c.bf16 %v778_v56, %v773_v54  ;;  %v783_v60 = vld [vmem:[#allocation4 + $0x140] sm:$0xff]  ;;  %v2592_v61 = vpack.c.bf16 %v789_v59, %v784_v58  ;;  %v788_v62 = vld [vmem:[#allocation4 + $0x168] sm:$0xff]  ;;  %v794_v1 = vld [vmem:[#allocation4 + $0x198] sm:$0xff] }
  0x34   :  { %2362 = vmatmul.mubr.msk.f32.vlgmr.msra.gmra.mrb[0].mxu0 %vm84_vm1, %v63_v26  ;;  %v2594_v63 = vpack.c.bf16 %v788_v62, %v783_v60  ;;  %v799_v2 = vld [vmem:[#allocation4 + $0x1c0] sm:$0xff]  ;;  %v793_v3 = vld [vmem:[#allocation4 + $0x190] sm:$0xff]  ;;  %v798_v5 = vld [vmem:[#allocation4 + $0x1b8] sm:$0xff] }
  0x35   :  { %887 = vmatprep.mubr.f32.mxu0 %v2889_v0  ;;  %2579 = vmatpush1.bf16.msra.mxu0 %v2578_v39  ;;  %v2596_v4 = vpack.c.bf16 %v799_v2, %v794_v1  ;;  %v2598_v6 = vpack.c.bf16 %v798_v5, %v793_v3  ;;  %v804_v7 = vld [vmem:[#allocation4 + $0x1e8] sm:$0xff]  ;;  %v809_v8 = vld [vmem:[#allocation4 + $0x210] sm:$0xff]  ;;  %v803_v9 = vld [vmem:[#allocation4 + $0x1e0] sm:$0xff] }
  0x36   :  { %2569 = vmatpush1.bf16.msra.mxu1 %v2568_v32  ;;  %2581 = vmatprep.subr.bf16.mxu0 %v2580_v44  ;;  %v2600_v10 = vpack.c.bf16 %v809_v8, %v804_v7  ;;  %v808_v11 = vld [vmem:[#allocation4 + $0x208] sm:$0xff]  ;;  %v2167_v16 = vld [vmem:[%s3323_s2 + $0x10] sm:$0xff]  ;;  %v2168_v19 = vld [vmem:[%s3323_s2 + $0x18] sm:$0xff] }
  0x37   :  { %v2602_v12 = vpack.c.bf16 %v808_v11, %v803_v9  ;;  %v308_v14 = vld [vmem:[%s3323_s2 + $0x8] sm:$0xff]  ;;  %v2171_v22 = vld [vmem:[%s3323_s2 + $0x20] sm:$0xff]  ;;  %v2175_v24 = vld [vmem:[%s3323_s2 + $0x30] sm:$0xff] }
  0x38   :  { %v2172_v23 = vld [vmem:[%s3323_s2 + $0x28] sm:$0xff]  ;;  %v746_v25 = vld [vmem:[#allocation4 + $0x18] sm:$0xff]  ;;  %v2179_v28 = vld [vmem:[%s3323_s2 + $0x40] sm:$0xff] }
  0x39   :  { %2162 = vmatmul.mubr.msk.f32.vlgmr.msra.gmra.mrb[2].mxu1 %vm84_vm1, %v63_v26  ;;  %2583 = vmatpush1.bf16.msra.mxu0 %v2582_v45  ;;  %v751_v26 = vld [vmem:[#allocation4 + $0x40] sm:$0xff]  ;;  %v2176_v27 = vld [vmem:[%s3323_s2 + $0x38] sm:$0xff]  ;;  %v745_v30 = vld [vmem:[#allocation4 + $0x10] sm:$0xff] }
  0x3a   :  { %2366 = vmatprep.mubr.msk.f32.mxu1 %vm309_vm2, %v307_v33  ;;  %2585 = vmatprep.subr.bf16.mxu0 %v2584_v48  ;;  %v2608_v29 = vpack.c.bf16 %v751_v26, %v746_v25  ;;  %v750_v31 = vld [vmem:[#allocation4 + $0x38] sm:$0xff]  ;;  %v756_v32 = vld [vmem:[#allocation4 + $0x68] sm:$0xff]  ;;  %v761_v33 = vld [vmem:[#allocation4 + $0x90] sm:$0xff] }
  0x3b   :  { %v2180_v34 = vld [vmem:[%s3323_s2 + $0x48] sm:$0xff]  ;;  %v2610_v35 = vpack.c.bf16 %v750_v31, %v745_v30  ;;  %v2612_v36 = vpack.c.bf16 %v761_v33, %v756_v32  ;;  %v755_v37 = vld [vmem:[#allocation4 + $0x60] sm:$0xff]  ;;  %v766_v39 = vld [vmem:[#allocation4 + $0xb8] sm:$0xff] }
  0x3c   :  { %v760_v38 = vld [vmem:[#allocation4 + $0x88] sm:$0xff]  ;;  %v771_v40 = vld [vmem:[#allocation4 + $0xe0] sm:$0xff]  ;;  %v765_v43 = vld [vmem:[#allocation4 + $0xb0] sm:$0xff] }
  0x3d   :  { %2587 = vmatpush1.bf16.msra.mxu0 %v2586_v51  ;;  %v2614_v41 = vpack.c.bf16 %v760_v38, %v755_v37  ;;  %v2616_v42 = vpack.c.bf16 %v771_v40, %v766_v39  ;;  %v770_v44 = vld [vmem:[#allocation4 + $0xd8] sm:$0xff]  ;;  %v776_v45 = vld [vmem:[#allocation4 + $0x108] sm:$0xff]  ;;  %v781_v46 = vld [vmem:[#allocation4 + $0x130] sm:$0xff] }
  0x3e   :  { %2589 = vmatprep.subr.bf16.mxu0 %v2588_v55  ;;  %v2618_v47 = vpack.c.bf16 %v770_v44, %v765_v43  ;;  %v2620_v48 = vpack.c.bf16 %v781_v46, %v776_v45  ;;  %v775_v49 = vld [vmem:[#allocation4 + $0x100] sm:$0xff]  ;;  %v780_v50 = vld [vmem:[#allocation4 + $0x128] sm:$0xff]  ;;  %v786_v51 = vld [vmem:[#allocation4 + $0x158] sm:$0xff] }
  0x3f   :  { %v791_v52 = vld [vmem:[#allocation4 + $0x180] sm:$0xff]  ;;  %v2622_v53 = vpack.c.bf16 %v780_v50, %v775_v49  ;;  %v785_v55 = vld [vmem:[#allocation4 + $0x150] sm:$0xff]  ;;  %v790_v56 = vld [vmem:[#allocation4 + $0x178] sm:$0xff] }
  0x40   :  { %v2624_v54 = vpack.c.bf16 %v791_v52, %v786_v51  ;;  %v801_v58 = vld [vmem:[#allocation4 + $0x1d0] sm:$0xff]  ;;  %v2626_v59 = vpack.c.bf16 %v790_v56, %v785_v55  ;;  %v800_v62 = vld [vmem:[#allocation4 + $0x1c8] sm:$0xff]  ;;  %v811_v1 = vld [vmem:[#allocation4 + $0x220] sm:$0xff] }
  0x41   :  { %2591 = vmatpush1.bf16.msra.mxu0 %v2590_v57  ;;  %v796_v57 = vld [vmem:[#allocation4 + $0x1a8] sm:$0xff]  ;;  %v810_v5 = vld [vmem:[#allocation4 + $0x218] sm:$0xff]  ;;  %v819_v8 = vld [vmem:[#allocation4 + $0x260] sm:$0xff] }
  0x42   :  { %2593 = vmatprep.subr.bf16.mxu0 %v2592_v61  ;;  %v2628_v60 = vpack.c.bf16 %v801_v58, %v796_v57  ;;  %v795_v61 = vld [vmem:[#allocation4 + $0x1a0] sm:$0xff]  ;;  %v814_v7 = vld [vmem:[#allocation4 + $0x238] sm:$0xff]  ;;  %v777_v37 = vld [vmem:[#allocation4 + $0x110] sm:$0xff] }
  0x43   :  { %v2630_v2 = vpack.c.bf16 %v800_v62, %v795_v61  ;;  %v2604_v9 = vpack.c.bf16 %v819_v8, %v814_v7  ;;  %v818_v11 = vld [vmem:[#allocation4 + $0x258] sm:$0xff]  ;;  %v767_v33 = vld [vmem:[#allocation4 + $0xc0] sm:$0xff]  ;;  %v797_v43 = vld [vmem:[#allocation4 + $0x1b0] sm:$0xff] }
  0x44   :  { %v782_v38 = vld [vmem:[#allocation4 + $0x138] sm:$0xff]  ;;  %v787_v40 = vld [vmem:[#allocation4 + $0x160] sm:$0xff]  ;;  %v817_v49 = vld [vmem:[#allocation4 + $0x250] sm:$0xff] }
  0x45   :  { %2595 = vmatpush1.bf16.msra.mxu0 %v2594_v63  ;;  %v806_v63 = vld [vmem:[#allocation4 + $0x1f8] sm:$0xff]  ;;  %v2652_v39 = vpack.c.bf16 %v782_v38, %v777_v37  ;;  %v807_v46 = vld [vmem:[#allocation4 + $0x200] sm:$0xff]  ;;  %v1607_v61 = vld [vmem:[%s3328_s7 + $0x30] sm:$0xff] }
  0x46   :  { %2597 = vmatprep.subr.bf16.mxu0 %v2596_v4  ;;  %v2632_v3 = vpack.c.bf16 %v811_v1, %v806_v63  ;;  %v805_v4 = vld [vmem:[#allocation4 + $0x1f0] sm:$0xff]  ;;  %v802_v44 = vld [vmem:[#allocation4 + $0x1d8] sm:$0xff]  ;;  %v1059_v52 = vld [vmem:[%s3326_s5] sm:$0xff] }
  0x47   :  { %v2660_v45 = vpack.c.bf16 %v802_v44, %v797_v43  ;;  %v822_v50 = vld [vmem:[#allocation4 + $0x278] sm:$0xff]  ;;  %v1601_v55 = vld [vmem:[%s3328_s7] sm:$0xff]  ;;  %v1610_v63 = vld [vmem:[%s3328_s7 + $0x48] sm:$0xff] }
  0x48   :  { %v2668_v51 = vpack.c.bf16 %v822_v50, %v817_v49  ;;  %v1604_v57 = vld [vmem:[%s3328_s7 + $0x18] sm:$0xff]  ;;  %v2698_v1 = vpack.c.bf16 %v1610_v63, %v1607_v61  ;;  %v1623_v8 = vld [vmem:[%s3328_s7 + $0xb0] sm:$0xff]  ;;  %v2188_v44 = vld [vmem:[%s3326_s5 + $0x20] sm:$0xff] }
  0x49   :  { %2599 = vmatpush1.bf16.msra.mxu0 %v2598_v6  ;;  %v2634_v6 = vpack.c.bf16 %v810_v5, %v805_v4  ;;  %v2694_v58 = vpack.c.bf16 %v1604_v57, %v1601_v55  ;;  %v1613_v5 = vld [vmem:[%s3328_s7 + $0x60] sm:$0xff]  ;;  %v1620_v7 = vld [vmem:[%s3328_s7 + $0x98] sm:$0xff]  ;;  %v2197_v49 = vld [vmem:[%s3326_s5 + $0x48] sm:$0xff] }
  0x4a   :  { %2601 = vmatprep.subr.bf16.mxu0 %v2600_v10  ;;  %v813_v10 = vld [vmem:[#allocation4 + $0x230] sm:$0xff]  ;;  %v1062_v43 = vld [vmem:[%s3326_s5 + $0x18] sm:$0xff]  ;;  %v1609_v63 = vld [vmem:[%s3328_s7 + $0x40] sm:$0xff] }
  0x4b   :  { %v2198_v50 = vld [vmem:[%s3326_s5 + $0x50] sm:$0xff]  ;;  %v2207_v61 = vld [vmem:[%s3326_s5 + $0x78] sm:$0xff] }
  0x4d   :  { %2603 = vmatpush1.bf16.msra.mxu0 %v2602_v12  ;;  %v816_v12 = vld [vmem:[#allocation4 + $0x248] sm:$0xff] }
  0x4e   :  { %2605 = vmatprep.subr.bf16.mxu0 %v2604_v9 }
 0x104   :  { %v154_v13 = vpop.f32.mrb[0].mxu1 }
 0x105   :  { %v156_v15 = vpop.f32.mrb[1].mxu1  ;;  %2364 = vmatprep.subr.mxu1 %v154_v13 }
 0x106   :  { %2365 = vmatpush3.msra.mxu1 %v154_v13  ;;  %v2606_v13 = vpack.c.bf16 %v818_v11, %v813_v10  ;;  %v2704_v10 = vpack.c.bf16 %v1623_v8, %v1620_v7  ;;  %v1619_v11 = vld [vmem:[%s3328_s7 + $0x90] sm:$0xff]  ;;  %v2215_v7 = vld [vmem:[%s3326_s5 + $0x98] sm:$0xff] }
 0x107   :  { %2367 = vmatmul.mubr.msk.f32.vlgmr.msra.gmra.mrb[4].mxu1 %vm309_vm2, %v308_v14  ;;  %2369 = vmatprep.subr.mxu1 %v156_v15  ;;  %v296_v17 = vpop.f32.mrb[0].mxu0  ;;  %v821_v14 = vld [vmem:[#allocation4 + $0x270] sm:$0xff] }
 0x108   :  { %2370 = vmatpush3.msra.mxu1 %v156_v15  ;;  %2371 = vmatprep.mubr.msk.f32.mxu1 %vm309_vm2, %v2167_v16  ;;  %v2363_v18 = vpop.f32.mrb[1].mxu0  ;;  %v815_v15 = vld [vmem:[#allocation4 + $0x240] sm:$0xff]  ;;  %v820_v16 = vld [vmem:[#allocation4 + $0x268] sm:$0xff] }
 0x109   :  { %v2638_v18 = vpack.c.bf16 %v820_v16, %v815_v15  ;;  %2607 = vmatpush1.bf16.msra.mxu0 %v2606_v13  ;;  %v1626_v13 = vld [vmem:[%s3328_s7 + $0xc8] sm:$0xff] }
 0x10c   :  { %v225_v20 = vpop.f32.mrb[2].mxu1 }
 0x10d   :  { %2374 = vmatprep.subr.mxu1 %v225_v20  ;;  %v227_v21 = vpop.f32.mrb[3].mxu1 }
 0x10f   :  { %2372 = vmatmul.mubr.msk.f32.vlgmr.msra.gmra.mrb[4].mxu1 %vm309_vm2, %v2168_v19  ;;  %v747_v19 = vld [vmem:[#allocation4 + $0x20] sm:$0xff] }
 0x110   :  { %2375 = vmatpush3.msra.mxu1 %v225_v20  ;;  %2376 = vmatprep.mubr.msk.f32.mxu1 %vm309_vm2, %v2171_v22  ;;  %v752_v20 = vld [vmem:[#allocation4 + $0x48] sm:$0xff]  ;;  %v2164_v22 = vld [vmem:[%s3324_s3] ss:$0 sm:$0xff] }
 0x111   :  { %2379 = vmatprep.subr.mxu1 %v227_v21 }
 0x117   :  { %2377 = vmatmul.mubr.msk.f32.vlgmr.msra.gmra.mrb[4].mxu1 %vm309_vm2, %v2172_v23 }
 0x118   :  { %2380 = vmatpush3.msra.mxu1 %v227_v21  ;;  %2381 = vmatprep.mubr.msk.f32.mxu1 %vm309_vm2, %v2175_v24  ;;  %v2640_v21 = vpack.c.bf16 %v752_v20, %v747_v19  ;;  %v1632_v19 = vld [vmem:[%s3328_s7 + $0xf8] sm:$0xff]  ;;  %v1635_v20 = vld [vmem:[%s3328_s7 + $0x110] sm:$0xff] }
 0x119   :  { %2384 = vmatprep.subr.mxu1 %v296_v17 }
 0x11a   :  { %2641 = vmatprep.subr.bf16.mxu0 %v2640_v21 }
 0x11f   :  { %2382 = vmatmul.mubr.msk.f32.vlgmr.msra.gmra.mrb[4].mxu1 %vm309_vm2, %v2176_v27  ;;  %v757_v27 = vld [vmem:[#allocation4 + $0x70] sm:$0xff] }
 0x120   :  { %2385 = vmatpush3.msra.mxu1 %v296_v17  ;;  %2386 = vmatprep.mubr.msk.f32.mxu1 %vm309_vm2, %v2179_v28  ;;  %v2636_v17 = vpack.c.bf16 %v821_v14, %v816_v12  ;;  %v762_v28 = vld [vmem:[#allocation4 + $0x98] sm:$0xff]  ;;  %v1622_v12 = vld [vmem:[%s3328_s7 + $0xa8] sm:$0xff]  ;;  %v1629_v14 = vld [vmem:[%s3328_s7 + $0xe0] sm:$0xff] }
 0x121   :  { %2609 = vmatprep.subr.bf16.mxu1 %v2608_v29  ;;  %v2644_v30 = vpack.c.bf16 %v762_v28, %v757_v27  ;;  %v2706_v15 = vpack.c.bf16 %v1622_v12, %v1619_v11  ;;  %v2708_v16 = vpack.c.bf16 %v1629_v14, %v1626_v13  ;;  %v1627_v12 = vld [vmem:[%s3328_s7 + $0xd0] sm:$0xff]  ;;  %v1630_v13 = vld [vmem:[%s3328_s7 + $0xe8] sm:$0xff] }
 0x122   :  { %v2740_v14 = vpack.c.bf16 %v1630_v13, %v1627_v12  ;;  %v2233_v12 = vld [vmem:[%s3329_s8 + $0x40] sm:$0xff]  ;;  %v2234_v13 = vld [vmem:[%s3329_s8 + $0x48] sm:$0xff] }
 0x127   :  { %2387 = vmatmul.mubr.msk.f32.vlgmr.msra.gmra.mrb[4].mxu1 %vm309_vm2, %v2180_v34  ;;  %v772_v34 = vld [vmem:[#allocation4 + $0xe8] sm:$0xff] }
 0x128   :  { %2611 = vmatpush1.bf16.msra.mxu1 %v2610_v35  ;;  %964 = vmatprep.mubr.f32.mxu1 %v2889_v0  ;;  %v2648_v35 = vpack.c.bf16 %v772_v34, %v767_v33 }
 0x129   :  { %2613 = vmatprep.subr.bf16.mxu1 %v2612_v36 }
 0x12c   :  { %2615 = vmatpush1.bf16.msra.mxu1 %v2614_v41  ;;  %v792_v41 = vld [vmem:[#allocation4 + $0x188] sm:$0xff] }
 0x12d   :  { %2617 = vmatprep.subr.bf16.mxu1 %v2616_v42  ;;  %v2656_v42 = vpack.c.bf16 %v792_v41, %v787_v40  ;;  %v1060_v41 = vld [vmem:[%s3326_s5 + $0x8] sm:$0xff] }
 0x130   :  { %2619 = vmatpush1.bf16.msra.mxu1 %v2618_v47  ;;  %v812_v47 = vld [vmem:[#allocation4 + $0x228] sm:$0xff] }
 0x131   :  { %2621 = vmatprep.subr.bf16.mxu1 %v2620_v48  ;;  %v2664_v48 = vpack.c.bf16 %v812_v47, %v807_v46  ;;  %v2190_v46 = vld [vmem:[%s3326_s5 + $0x30] sm:$0xff]  ;;  %v2191_v47 = vld [vmem:[%s3326_s5 + $0x38] sm:$0xff] }
 0x134   :  { %2623 = vmatpush1.bf16.msra.mxu1 %v2622_v53  ;;  %v1602_v53 = vld [vmem:[%s3328_s7 + $0x8] sm:$0xff] }
 0x135   :  { %2625 = vmatprep.subr.bf16.mxu1 %v2624_v54  ;;  %v1605_v54 = vld [vmem:[%s3328_s7 + $0x20] sm:$0xff] }
 0x136   :  { %v2692_v56 = vpack.c.bf16 %v1605_v54, %v1602_v53  ;;  %v1603_v53 = vld [vmem:[%s3328_s7 + $0x10] sm:$0xff]  ;;  %v1606_v54 = vld [vmem:[%s3328_s7 + $0x28] sm:$0xff] }
 0x138   :  { %2627 = vmatpush1.bf16.msra.mxu1 %v2626_v59  ;;  %v1608_v59 = vld [vmem:[%s3328_s7 + $0x38] sm:$0xff] }
 0x139   :  { %2629 = vmatprep.subr.bf16.mxu1 %v2628_v60  ;;  %v1611_v60 = vld [vmem:[%s3328_s7 + $0x50] sm:$0xff] }
 0x13a   :  { %v2696_v62 = vpack.c.bf16 %v1611_v60, %v1608_v59  ;;  %v2724_v60 = vpack.c.bf16 %v1606_v54, %v1603_v53 }
 0x13c   :  { %2631 = vmatpush1.bf16.msra.mxu1 %v2630_v2  ;;  %v1614_v2 = vld [vmem:[%s3328_s7 + $0x68] sm:$0xff] }
 0x13d   :  { %2633 = vmatprep.subr.bf16.mxu1 %v2632_v3  ;;  %v1617_v3 = vld [vmem:[%s3328_s7 + $0x80] sm:$0xff] }
 0x13e   :  { %v2700_v4 = vpack.c.bf16 %v1617_v3, %v1614_v2  ;;  %v2213_v2 = vld [vmem:[%s3326_s5 + $0x88] sm:$0xff]  ;;  %v2214_v3 = vld [vmem:[%s3326_s5 + $0x90] sm:$0xff] }
 0x140   :  { %2635 = vmatpush1.bf16.msra.mxu1 %v2634_v6  ;;  %v1616_v6 = vld [vmem:[%s3328_s7 + $0x78] sm:$0xff] }
 0x141   :  { %2637 = vmatprep.subr.bf16.mxu1 %v2636_v17  ;;  %v2702_v9 = vpack.c.bf16 %v1616_v6, %v1613_v5  ;;  %v1625_v17 = vld [vmem:[%s3328_s7 + $0xc0] sm:$0xff]  ;;  %v1615_v5 = vld [vmem:[%s3328_s7 + $0x70] sm:$0xff]  ;;  %v1618_v6 = vld [vmem:[%s3328_s7 + $0x88] sm:$0xff] }
 0x142   :  { %v2732_v8 = vpack.c.bf16 %v1618_v6, %v1615_v5  ;;  %v1831_v5 = vld [vmem:[%s3329_s8 + $0x8] sm:$0xff]  ;;  %v1832_v6 = vld [vmem:[%s3329_s8 + $0x10] sm:$0xff] }
 0x144   :  { %2639 = vmatpush1.bf16.msra.mxu1 %v2638_v18  ;;  %v1628_v18 = vld [vmem:[%s3328_s7 + $0xd8] sm:$0xff] }
 0x1fa   :  { %v2388_v23 = vpop.f32.mrb[4].mxu1 }
 0x1fb   :  { %v726_v24 = vpop.f32.mrb[5].mxu1  ;;  %v2780_v25 = vadd.f32 %v2388_v23, %v2164_v22  ;;  %v1631_v23 = vld [vmem:[%s3328_s7 + $0xf0] sm:$0xff] }
 0x1fc   :  { %v2781_v26 = vadd.f32 %v2164_v22, %v726_v24  ;;  %v2712_v22 = vpack.c.bf16 %v1635_v20, %v1632_v19  ;;  %v1634_v24 = vld [vmem:[%s3328_s7 + $0x108] sm:$0xff]  ;;  %v1640_v19 = vld [vmem:[%s3328_s7 + $0x138] sm:$0xff]  ;;  %v1639_v20 = vld [vmem:[%s3328_s7 + $0x130] sm:$0xff] }
 0x1fd   :  { %v740_v31 = vmul.f32 0.2, %v2780_v25  ;;  %vm738_vm4 = vcmp.ge.f32.partialorder %v2780_v25, 0.0  ;;  %v2714_v27 = vpack.c.bf16 %v1634_v24, %v1631_v23  ;;  %v1644_v24 = vld [vmem:[%s3328_s7 + $0x158] sm:$0xff] }
 0x1fe   :  { %vm737_vm3 = vcmp.ge.f32.partialorder %v2781_v26, 0.0  ;;  %v739_v29 = vmul.f32 0.2, %v2781_v26 }
 0x1ff   :  { %v742_v36 = vsel %vm738_vm4, %v2780_v25, %v740_v31  ;;  %v1638_v25 = vld [vmem:[%s3328_s7 + $0x128] sm:$0xff] }
 0x200   :  { %v741_v32 = vsel %vm737_vm3, %v2781_v26, %v739_v29  ;;  %v1641_v26 = vld [vmem:[%s3328_s7 + $0x140] sm:$0xff] }
 0x201   :  { %888 = vmatmul.mubr.f32.vlgmr.msra.gmra.mrb[2].mxu0 %v741_v32  ;;  %965 = vmatmul.mubr.f32.vlgmr.msra.gmra.mrb[6].mxu1 %v741_v32  ;;  %v2716_v28 = vpack.c.bf16 %v1641_v26, %v1638_v25  ;;  %v1647_v25 = vld [vmem:[%s3328_s7 + $0x170] sm:$0xff] }
 0x202   :  { %2643 = vmatpush3.bf16.msra.mxu0 %v2640_v21  ;;  %893 = vmatprep.mubr.f32.mxu0 %v2889_v0  ;;  %v2710_v21 = vpack.c.bf16 %v1628_v18, %v1625_v17  ;;  %v1637_v18 = vld [vmem:[%s3328_s7 + $0x120] sm:$0xff]  ;;  %v2720_v26 = vpack.c.bf16 %v1647_v25, %v1644_v24 }
 0x203   :  { %970 = vmatprep.mubr.f32.mxu1 %v2889_v0  ;;  %2645 = vmatprep.subr.bf16.mxu0 %v2644_v30 }
 0x205   :  { %894 = vmatmul.mubr.f32.gmra.mrb[4].mxu0 %v742_v36  ;;  %971 = vmatmul.mubr.f32.gmra.mrb[8].mxu1 %v742_v36 }
 0x206   :  { %2647 = vmatpush3.bf16.msra.mxu0 %v2644_v30  ;;  %2421 = vmatprep.mubr.f32.mxu0 %v741_v32 }
 0x207   :  { %2649 = vmatprep.subr.bf16.mxu0 %v2648_v35  ;;  %2428 = vmatprep.mubr.msk.f32.mxu1 %vm1063_vm5, %v1059_v52  ;;  %v2204_v52 = vld [vmem:[%s3326_s5 + $0x60] sm:$0xff] }
 0x20a   :  { %2651 = vmatpush3.bf16.msra.mxu0 %v2648_v35 }
 0x20b   :  { %2653 = vmatprep.subr.bf16.mxu0 %v2652_v39 }
 0x20e   :  { %2655 = vmatpush3.bf16.msra.mxu0 %v2652_v39 }
 0x20f   :  { %2657 = vmatprep.subr.bf16.mxu0 %v2656_v42 }
 0x212   :  { %2659 = vmatpush3.bf16.msra.mxu0 %v2656_v42  ;;  %v1061_v42 = vld [vmem:[%s3326_s5 + $0x10] sm:$0xff] }
 0x213   :  { %2661 = vmatprep.subr.bf16.mxu0 %v2660_v45 }
 0x216   :  { %2663 = vmatpush3.bf16.msra.mxu0 %v2660_v45  ;;  %v2189_v45 = vld [vmem:[%s3326_s5 + $0x28] sm:$0xff] }
 0x217   :  { %2665 = vmatprep.subr.bf16.mxu0 %v2664_v48 }
 0x21a   :  { %2667 = vmatpush3.bf16.msra.mxu0 %v2664_v48  ;;  %v2196_v48 = vld [vmem:[%s3326_s5 + $0x40] sm:$0xff] }
 0x21b   :  { %2669 = vmatprep.subr.bf16.mxu0 %v2668_v51 }
 0x21e   :  { %2671 = vmatpush3.bf16.msra.mxu0 %v2668_v51  ;;  %v2199_v51 = vld [vmem:[%s3326_s5 + $0x58] sm:$0xff] }
 0x21f   :  { %2693 = vmatprep.subr.bf16.mxu0 %v2692_v56  ;;  %v2205_v56 = vld [vmem:[%s3326_s5 + $0x68] sm:$0xff] }
 0x221   :  { %2422 = vmatmul.mubr.f32.vlgmr.msra.gmra.mrb[6].mxu0 %v742_v36 }
 0x222   :  { %1713 = vmatprep.mubr.f32.mxu0 %v2889_v0  ;;  %2695 = vmatpush1.bf16.msra.mxu0 %v2694_v58  ;;  %v2206_v58 = vld [vmem:[%s3326_s5 + $0x70] sm:$0xff] }
 0x223   :  { %2697 = vmatprep.subr.bf16.mxu0 %v2696_v62  ;;  %v2212_v62 = vld [vmem:[%s3326_s5 + $0x80] sm:$0xff] }
 0x226   :  { %2699 = vmatpush1.bf16.msra.mxu0 %v2698_v1  ;;  %v1612_v1 = vld [vmem:[%s3328_s7 + $0x58] sm:$0xff] }
 0x227   :  { %2701 = vmatprep.subr.bf16.mxu0 %v2700_v4  ;;  %v2728_v4 = vpack.c.bf16 %v1612_v1, %v1609_v63 }
 0x22a   :  { %2703 = vmatpush1.bf16.msra.mxu0 %v2702_v9  ;;  %v1621_v9 = vld [vmem:[%s3328_s7 + $0xa0] sm:$0xff] }
 0x22b   :  { %2705 = vmatprep.subr.bf16.mxu0 %v2704_v10  ;;  %v1624_v10 = vld [vmem:[%s3328_s7 + $0xb8] sm:$0xff] }
 0x22c   :  { %v2736_v11 = vpack.c.bf16 %v1624_v10, %v1621_v9  ;;  %v2226_v9 = vld [vmem:[%s3329_s8 + $0x28] sm:$0xff]  ;;  %v2227_v10 = vld [vmem:[%s3329_s8 + $0x30] sm:$0xff] }
 0x22e   :  { %2707 = vmatpush1.bf16.msra.mxu0 %v2706_v15  ;;  %v1633_v15 = vld [vmem:[%s3328_s7 + $0x100] sm:$0xff] }
 0x22f   :  { %2709 = vmatprep.subr.bf16.mxu0 %v2708_v16  ;;  %v1636_v16 = vld [vmem:[%s3328_s7 + $0x118] sm:$0xff] }
 0x230   :  { %v2744_v17 = vpack.c.bf16 %v1636_v16, %v1633_v15  ;;  %v2236_v15 = vld [vmem:[%s3329_s8 + $0x58] sm:$0xff]  ;;  %v2220_v16 = vld [vmem:[%s3330_s9] ss:$0 sm:$0xff] }
 0x232   :  { %2711 = vmatpush1.bf16.msra.mxu0 %v2710_v21  ;;  %v2718_v21 = vpack.c.bf16 %v1640_v19, %v1637_v18 }
 0x233   :  { %2713 = vmatprep.subr.bf16.mxu0 %v2712_v22  ;;  %v1642_v22 = vld [vmem:[%s3328_s7 + $0x148] sm:$0xff] }
 0x234   :  { %v2748_v23 = vpack.c.bf16 %v1642_v22, %v1639_v20 }
 0x236   :  { %2715 = vmatpush1.bf16.msra.mxu0 %v2714_v27  ;;  %v1643_v27 = vld [vmem:[%s3328_s7 + $0x150] sm:$0xff] }
 0x237   :  { %2717 = vmatprep.subr.bf16.mxu0 %v2716_v28  ;;  %v1646_v28 = vld [vmem:[%s3328_s7 + $0x168] sm:$0xff] }
 0x23a   :  { %2719 = vmatpush1.bf16.msra.mxu0 %v2718_v21 }
 0x23b   :  { %2721 = vmatprep.subr.bf16.mxu0 %v2720_v26 }
 0x2d4   :  { %v889_v29 = vpop.f32.mrb[2].mxu0  ;;  %v966_v30 = vpop.f32.mrb[6].mxu1 }
 0x2d5   :  { %v891_v31 = vpop.f32.mrb[3].mxu0  ;;  %v968_v32 = vpop.f32.mrb[7].mxu1 }
 0x2d8   :  { %v895_v33 = vpop.f32.mrb[4].mxu0  ;;  %v972_v34 = vpop.f32.mrb[8].mxu1 }
 0x2d9   :  { %v2672_v35 = vpack.c.bf16 %v895_v33, %v889_v29  ;;  %v2680_v36 = vpack.c.bf16 %v972_v34, %v966_v30  ;;  %v897_v37 = vpop.f32.mrb[5].mxu0  ;;  %v974_v38 = vpop.f32.mrb[9].mxu1  ;;  %v1645_v29 = vld [vmem:[%s3328_s7 + $0x160] sm:$0xff]  ;;  %v2722_v30 = vpack.c.bf16 %v1646_v28, %v1643_v27 }
 0x2da   :  { %v2676_v39 = vpack.c.bf16 %v897_v37, %v891_v31  ;;  %v2684_v40 = vpack.c.bf16 %v974_v38, %v968_v32  ;;  %v1648_v31 = vld [vmem:[%s3328_s7 + $0x178] sm:$0xff]  ;;  %v2183_v33 = vld [vmem:[%s3327_s6] ss:$0 sm:$0xff] }
 0x2db   :  { %2673 = vmatprep.subr.bf16.mxu1 %v2672_v35  ;;  %v2752_v32 = vpack.c.bf16 %v1648_v31, %v1645_v29  ;;  %2723 = vmatpush1.bf16.msra.mxu0 %v2722_v30 }
 0x2dc   :  { %2675 = vmatpush3.bf16.msra.mxu1 %v2672_v35 }
 0x2dd   :  { %2677 = vmatprep.subr.bf16.mxu1 %v2676_v39 }
 0x2df   :  { %2429 = vmatmul.mubr.msk.f32.vlgmr.msra.gmra.mrb[10].mxu1 %vm1063_vm5, %v1060_v41 }
 0x2e0   :  { %2679 = vmatpush3.bf16.msra.mxu1 %v2676_v39  ;;  %2431 = vmatprep.mubr.msk.f32.mxu1 %vm1063_vm5, %v1061_v42 }
 0x2e1   :  { %2681 = vmatprep.subr.bf16.mxu1 %v2680_v36 }
 0x2e3   :  { %2432 = vmatmul.mubr.msk.f32.gmra.mrb[12].mxu1 %vm1063_vm5, %v1062_v43 }
 0x2e4   :  { %2438 = vmatprep.mubr.msk.f32.mxu1 %vm1063_vm5, %v2188_v44 }
 0x2e7   :  { %2439 = vmatmul.mubr.msk.f32.vlgmr.msra.gmra.mrb[10].mxu1 %vm1063_vm5, %v2189_v45 }
 0x2e8   :  { %2683 = vmatpush3.bf16.msra.mxu1 %v2680_v36  ;;  %2441 = vmatprep.mubr.msk.f32.mxu1 %vm1063_vm5, %v2190_v46 }
 0x2e9   :  { %2685 = vmatprep.subr.bf16.mxu1 %v2684_v40 }
 0x2eb   :  { %2442 = vmatmul.mubr.msk.f32.gmra.mrb[12].mxu1 %vm1063_vm5, %v2191_v47 }
 0x2ec   :  { %2448 = vmatprep.mubr.msk.f32.mxu1 %vm1063_vm5, %v2196_v48 }
 0x2ef   :  { %2449 = vmatmul.mubr.msk.f32.vlgmr.msra.gmra.mrb[10].mxu1 %vm1063_vm5, %v2197_v49 }
 0x2f0   :  { %2687 = vmatpush3.bf16.msra.mxu1 %v2684_v40  ;;  %2451 = vmatprep.mubr.msk.f32.mxu1 %vm1063_vm5, %v2198_v50  ;;  %v1830_v50 = vld [vmem:[%s3329_s8] sm:$0xff] }
 0x2f3   :  { %2452 = vmatmul.mubr.msk.f32.gmra.mrb[12].mxu1 %vm1063_vm5, %v2199_v51 }
 0x2f4   :  { %v2423_v55 = vpop.f32.mrb[6].mxu0  ;;  %2458 = vmatprep.mubr.msk.f32.mxu1 %vm1063_vm5, %v2204_v52 }
 0x2f5   :  { %v1043_v57 = vpop.f32.mrb[7].mxu0 }
 0x2f6   :  { %v2688_v59 = vpack.c.bf16 %v2423_v55, %v1043_v57 }
 0x2f7   :  { %2459 = vmatmul.mubr.msk.f32.vlgmr.msra.gmra.mrb[10].mxu1 %vm1063_vm5, %v2205_v56 }
 0x2f8   :  { %2689 = vmatprep.subr.bf16.mxu1 %v2688_v59  ;;  %2461 = vmatprep.mubr.msk.f32.mxu1 %vm1063_vm5, %v2206_v58 }
 0x2f9   :  { %2691 = vmatpush3.bf16.msra.mxu1 %v2688_v59 }
 0x2fa   :  { %2725 = vmatprep.subr.bf16.mxu1 %v2724_v60 }
 0x2fb   :  { %2462 = vmatmul.mubr.msk.f32.gmra.mrb[12].mxu1 %vm1063_vm5, %v2207_v61 }
 0x2fc   :  { %2468 = vmatprep.mubr.msk.f32.mxu1 %vm1063_vm5, %v2212_v62 }
 0x2ff   :  { %2469 = vmatmul.mubr.msk.f32.vlgmr.msra.gmra.mrb[10].mxu1 %vm1063_vm5, %v2213_v2 }
 0x300   :  { %2471 = vmatprep.mubr.msk.f32.mxu1 %vm1063_vm5, %v2214_v3  ;;  %2727 = vmatpush3.bf16.msra.mxu1 %v2724_v60 }
 0x301   :  { %2729 = vmatprep.subr.bf16.mxu1 %v2728_v4 }
 0x303   :  { %2472 = vmatmul.mubr.msk.f32.gmra.mrb[12].mxu1 %vm1063_vm5, %v2215_v7  ;;  %v1833_v7 = vld [vmem:[%s3329_s8 + $0x18] sm:$0xff] }
 0x304   :  { %2731 = vmatpush3.bf16.msra.mxu1 %v2728_v4 }
 0x305   :  { %2733 = vmatprep.subr.bf16.mxu1 %v2732_v8 }
 0x308   :  { %2735 = vmatpush3.bf16.msra.mxu1 %v2732_v8  ;;  %v2225_v8 = vld [vmem:[%s3329_s8 + $0x20] sm:$0xff] }
 0x309   :  { %2737 = vmatprep.subr.bf16.mxu1 %v2736_v11 }
 0x30c   :  { %2739 = vmatpush3.bf16.msra.mxu1 %v2736_v11  ;;  %v2228_v11 = vld [vmem:[%s3329_s8 + $0x38] sm:$0xff] }
 0x30d   :  { %2741 = vmatprep.subr.bf16.mxu1 %v2740_v14 }
 0x310   :  { %2743 = vmatpush3.bf16.msra.mxu1 %v2740_v14  ;;  %v2235_v14 = vld [vmem:[%s3329_s8 + $0x50] sm:$0xff] }
 0x311   :  { %2745 = vmatprep.subr.bf16.mxu1 %v2744_v17 }
 0x314   :  { %2747 = vmatpush3.bf16.msra.mxu1 %v2744_v17 }
 0x315   :  { %2749 = vmatprep.subr.bf16.mxu1 %v2748_v23 }
 0x318   :  { %2751 = vmatpush3.bf16.msra.mxu1 %v2748_v23 }
 0x319   :  { %2753 = vmatprep.subr.bf16.mxu1 %v2752_v32 }
 0x31c   :  { %2755 = vmatpush3.bf16.msra.mxu1 %v2752_v32 }
 0x3d2   :  { %v2470_v34 = vpop.f32.mrb[10].mxu1 }
 0x3d3   :  { %v2782_v35 = vadd.f32 %v2470_v34, %v2183_v33  ;;  %v1566_v36 = vpop.f32.mrb[11].mxu1 }
 0x3d4   :  { %v2783_v37 = vadd.f32 %v2183_v33, %v1566_v36 }
 0x3d5   :  { %v1594_v38 = vmul.f32 0.2, %v2782_v35  ;;  %vm1590_vm6 = vcmp.ge.f32.partialorder %v2782_v35, 0.0 }
 0x3d6   :  { %vm1589_vm7 = vcmp.ge.f32.partialorder %v2783_v37, 0.0  ;;  %v1593_v39 = vmul.f32 0.2, %v2783_v37  ;;  %v2473_v40 = vpop.f32.mrb[12].mxu1 }
 0x3d7   :  { %v2784_v41 = vadd.f32 %v2473_v40, %v2183_v33  ;;  %v1576_v42 = vpop.f32.mrb[13].mxu1  ;;  %v1598_v45 = vsel %vm1590_vm6, %v2782_v35, %v1594_v38 }
 0x3d8   :  { %v2785_v43 = vadd.f32 %v2183_v33, %v1576_v42  ;;  %v1597_v44 = vsel %vm1589_vm7, %v2783_v37, %v1593_v39 }
 0x3d9   :  { %v1596_v46 = vmul.f32 0.2, %v2784_v41  ;;  %1714 = vmatmul.mubr.f32.vlgmr.msra.gmra.mrb[8].mxu0 %v1597_v44  ;;  %2506 = vmatprep.mubr.f32.mxu1 %v1597_v44  ;;  %vm1592_vm9 = vcmp.ge.f32.partialorder %v2784_v41, 0.0 }
 0x3da   :  { %v1595_v47 = vmul.f32 0.2, %v2785_v43  ;;  %2507 = vmatmul.mubr.f32.vlgmr.msra.gmra.mrb[14].mxu1 %v1598_v45  ;;  %1719 = vmatprep.mubr.f32.mxu0 %v2889_v0  ;;  %vm1591_vm8 = vcmp.ge.f32.partialorder %v2785_v43, 0.0 }
 0x3db   :  { %v1600_v49 = vsel %vm1592_vm9, %v2784_v41, %v1596_v46 }
 0x3dc   :  { %v1599_v48 = vsel %vm1591_vm8, %v2785_v43, %v1595_v47 }
 0x3dd   :  { %1720 = vmatmul.mubr.f32.gmra.mrb[10].mxu0 %v1598_v45  ;;  %2509 = vmatprep.mubr.f32.mxu1 %v1599_v48 }
 0x3de   :  { %2510 = vmatmul.mubr.f32.gmra.mrb[16].mxu1 %v1600_v49  ;;  %1725 = vmatprep.mubr.f32.mxu0 %v2889_v0 }
 0x3e1   :  { %1726 = vmatmul.mubr.f32.gmra.mrb[12].mxu0 %v1599_v48 }
 0x3e2   :  { %1731 = vmatprep.mubr.f32.mxu0 %v2889_v0 }
 0x3e5   :  { %1732 = vmatmul.mubr.f32.gmra.mrb[14].mxu0 %v1600_v49 }
 0x3e6   :  { %2520 = vmatprep.mubr.msk.f32.mxu0 %vm84_vm1, %v1830_v50 }
 0x4ac   :  { %v1715_v51 = vpop.f32.mrb[8].mxu0 }
 0x4ad   :  { %v1717_v52 = vpop.f32.mrb[9].mxu0  ;;  %v2508_v53 = vpop.f32.mrb[14].mxu1 }
 0x4ae   :  { %v1804_v54 = vpop.f32.mrb[15].mxu1 }
 0x4af   :  { %v2772_v55 = vpack.c.bf16 %v2508_v53, %v1804_v54 }
 0x4b0   :  { %v1721_v56 = vpop.f32.mrb[10].mxu0 }
 0x4b1   :  { %v2756_v57 = vpack.c.bf16 %v1721_v56, %v1715_v51  ;;  %v1723_v58 = vpop.f32.mrb[11].mxu0  ;;  %v2511_v59 = vpop.f32.mrb[16].mxu1 }
 0x4b2   :  { %v2764_v60 = vpack.c.bf16 %v1723_v58, %v1717_v52  ;;  %v1814_v61 = vpop.f32.mrb[17].mxu1 }
 0x4b3   :  { %v2776_v62 = vpack.c.bf16 %v2511_v59, %v1814_v61  ;;  %2757 = vmatprep.subr.bf16.mxu0 %v2756_v57 }
 0x4b4   :  { %v1727_v0 = vpop.f32.mrb[12].mxu0  ;;  %2759 = vmatpush3.bf16.msra.mxu0 %v2756_v57 }
 0x4b5   :  { %v1729_v63 = vpop.f32.mrb[13].mxu0 }
 0x4b8   :  { %v1733_v1 = vpop.f32.mrb[14].mxu0 }
 0x4b9   :  { %v2760_v2 = vpack.c.bf16 %v1733_v1, %v1727_v0  ;;  %v1735_v3 = vpop.f32.mrb[15].mxu0 }
 0x4ba   :  { %v2768_v4 = vpack.c.bf16 %v1735_v3, %v1729_v63 }
 0x4bb   :  { %2761 = vmatprep.subr.bf16.mxu0 %v2760_v2 }
 0x4bc   :  { %2763 = vmatpush3.bf16.msra.mxu0 %v2760_v2 }
 0x4bd   :  { %2765 = vmatprep.subr.bf16.mxu0 %v2764_v60 }
 0x4bf   :  { %2521 = vmatmul.mubr.msk.f32.vlgmr.msra.gmra.mrb[16].mxu0 %vm84_vm1, %v1831_v5 }
 0x4c0   :  { %2767 = vmatpush3.bf16.msra.mxu0 %v2764_v60  ;;  %2523 = vmatprep.mubr.msk.f32.mxu0 %vm84_vm1, %v1832_v6 }
 0x4c1   :  { %2769 = vmatprep.subr.bf16.mxu0 %v2768_v4 }
 0x4c3   :  { %2524 = vmatmul.mubr.msk.f32.gmra.mrb[18].mxu0 %vm84_vm1, %v1833_v7 }
 0x4c4   :  { %2771 = vmatpush3.bf16.msra.mxu0 %v2768_v4  ;;  %2534 = vmatprep.mubr.msk.f32.mxu0 %vm84_vm1, %v2225_v8 }
 0x4c5   :  { %2773 = vmatprep.subr.bf16.mxu0 %v2772_v55 }
 0x4c7   :  { %2535 = vmatmul.mubr.msk.f32.vlgmr.msra.gmra.mrb[16].mxu0 %vm84_vm1, %v2226_v9 }
 0x4c8   :  { %2775 = vmatpush3.bf16.msra.mxu0 %v2772_v55  ;;  %2537 = vmatprep.mubr.msk.f32.mxu0 %vm84_vm1, %v2227_v10 }
 0x4c9   :  { %2777 = vmatprep.subr.bf16.mxu0 %v2776_v62 }
 0x4cb   :  { %2538 = vmatmul.mubr.msk.f32.gmra.mrb[18].mxu0 %vm84_vm1, %v2228_v11 }
 0x4cc   :  { %2779 = vmatpush3.bf16.msra.mxu0 %v2776_v62  ;;  %2548 = vmatprep.mubr.msk.f32.mxu0 %vm84_vm1, %v2233_v12 }
 0x4cf   :  { %2549 = vmatmul.mubr.msk.f32.vlgmr.msra.gmra.mrb[16].mxu0 %vm84_vm1, %v2234_v13 }
 0x4d0   :  { %2551 = vmatprep.mubr.msk.f32.mxu0 %vm84_vm1, %v2235_v14 }
 0x4d3   :  { %2552 = vmatmul.mubr.msk.f32.gmra.mrb[18].mxu0 %vm84_vm1, %v2236_v15 }
 0x5a2   :  { %v2550_v17 = vpop.f32.mrb[16].mxu0 }
 0x5a3   :  { %v2786_v18 = vadd.f32 %v2550_v17, %v2220_v16  ;;  %v2124_v19 = vpop.f32.mrb[17].mxu0 }
 0x5a4   :  { %v2787_v20 = vadd.f32 %v2220_v16, %v2124_v19 }
 0x5a5   :  { %2829 = vtanh.f32 %v2786_v18 }
 0x5a6   :  { %2831 = vtanh.f32 %v2787_v20  ;;  %v2553_v21 = vpop.f32.mrb[18].mxu0 }
 0x5a7   :  { %v2788_v22 = vadd.f32 %v2553_v21, %v2220_v16  ;;  %v2134_v23 = vpop.f32.mrb[19].mxu0 }
 0x5a8   :  { %v2789_v24 = vadd.f32 %v2220_v16, %v2134_v23 }
 0x5a9   :  { %2833 = vtanh.f32 %v2788_v22 }
 0x5aa   :  { %2835 = vtanh.f32 %v2789_v24 }
 0x5af   :  { %v2830_v25 = vpop.eup %2829 }
 0x5b0   :  { %v2832_v26 = vpop.eup %2831  ;;  %2152 = vst [vmem:[%s3331_s10 + $0x8] sm:$0xff] %v2830_v25 }
 0x5b1   :  { %2151 = vst [vmem:[%s3331_s10] sm:$0xff] %v2832_v26 }
 0x5b3   :  { %v2834_v27 = vpop.eup %2833 }
 0x5b4   :  { %v2836_v28 = vpop.eup %2835  ;;  %2154 = vst [vmem:[%s3331_s10 + $0x18] sm:$0xff] %v2834_v27 }
 0x5b5   :  { %2153 = vst [vmem:[%s3331_s10 + $0x10] sm:$0xff] %v2836_v28 }
 0x5b6   :  { %2159 = vsyncpa [#allocation3], 1 }
 0x5b7   :  { %2160 = vsyncpa [#allocation5], 1 }

</bundles_post_ra>
